<compile_context>
chip_gen: v5e
topology: v5e:2x2
jax: 0.10.0
libtpu: 0.0.40
codegen_flags: <defaults>
</compile_context>

<pallas_src>
import functools

import jax
import jax.numpy as jnp
from jax.experimental import pallas as pl
from jax.experimental.pallas import tpu as pltpu

_LANE = 128
_SUB = 8
_MAX_TILE_ROWS = 2048   # 3 MiB per f32 input block -> 12 MiB double-buffered
_MIN_GRID_STEPS = 4     # give v7x megacore (2 TCs) something to shard

# Folded constants.  With res' = (res+1)*127.5, gt' = (gt+1)*127.5:
#   r = 127.5*d0, g = 127.5*d1, b = 127.5*d2,  r_mean = 63.75*s + 127.5
#   p = (512+r_mean)*r^2/256 + 4*g^2 + (767-r_mean)*b^2/256
#     = (C1 + C2*s)*d0^2 + C3*d1^2 + (C1 - C2*s)*d2^2
_C1 = 639.5 * 127.5 * 127.5 / 256.0
_C2 = 63.75 * 127.5 * 127.5 / 256.0
_C3 = 4.0 * 127.5 * 127.5


def _round_up(x, m):
    return ((x + m - 1) // m) * m


def _color_loss_kernel(res_ref, gt_ref, out_ref, *, n_valid, mask_last):
    # res_ref, gt_ref: (1, 3, R, 128) VMEM tiles; out_ref: (1, 1, 8, 128) f32.
    t = pl.program_id(1)

    r0 = res_ref[0, 0, :, :].astype(jnp.float32)
    r1 = res_ref[0, 1, :, :].astype(jnp.float32)
    r2 = res_ref[0, 2, :, :].astype(jnp.float32)
    g0 = gt_ref[0, 0, :, :].astype(jnp.float32)
    g1 = gt_ref[0, 1, :, :].astype(jnp.float32)
    g2 = gt_ref[0, 2, :, :].astype(jnp.float32)

    d0 = r0 - g0
    d1 = r1 - g1
    d2 = r2 - g2
    s = r0 + g0
    cs = _C2 * s
    p = (_C1 + cs) * (d0 * d0) + _C3 * (d1 * d1) + (_C1 - cs) * (d2 * d2)
    val = jnp.sqrt(p + 1e-8)                      # (R, 128)

    R, L = val.shape

    def reduce_rows(v):
        # Pure-VPU reduce of R rows into one (8, 128) partial-sum block.
        return jnp.sum(v.reshape(R // _SUB, _SUB, L), axis=0)

    if mask_last:
        last = pl.num_programs(1) - 1

        @pl.when(t != last)
        def _():
            out_ref[0, 0, :, :] = reduce_rows(val)

        @pl.when(t == last)
        def _():
            # where-select (not multiply) so garbage from the partial last DMA
            # block / padded pixels cannot propagate into the sum.
            row = jax.lax.broadcasted_iota(jnp.int32, (R, L), 0)
            lane = jax.lax.broadcasted_iota(jnp.int32, (R, L), 1)
            flat = (t * R + row) * L + lane
            out_ref[0, 0, :, :] = reduce_rows(jnp.where(flat < n_valid, val, 0.0))
    else:
        out_ref[0, 0, :, :] = reduce_rows(val)


def color_loss(res, gt, *, max_tile_rows=_MAX_TILE_ROWS):
    """ColorLoss forward. res, gt: [B, 3, H, W] in [-1, 1]. Returns scalar f32."""
    B, C, H, W = res.shape
    assert C == 3 and gt.shape == res.shape
    n_pixels = H * W

    def _float(x):
        return x if jnp.issubdtype(x.dtype, jnp.floating) else x.astype(jnp.float32)

    res = _float(res)   # bf16/f16 kept at native width (halves HBM reads)
    gt = _float(gt)

    # Sub-32-bit dtypes pack along sublanes -> larger row alignment requirement.
    align = max(_SUB,
                (4 // res.dtype.itemsize) * _SUB,
                (4 // gt.dtype.itemsize) * _SUB)

    rows = pl.cdiv(n_pixels, _LANE)

    # Pad only when needed for a legal lane-dense reshape (H*W % 128 != 0) or
    # when the image is tiny; the common aligned case is a free reshape.
    if n_pixels % _LANE == 0 and rows >= align:
        rows_arr = rows
    else:
        rows_arr = _round_up(max(rows, align), align)
    pad = rows_arr * _LANE - n_pixels

    # Balanced tile geometry: tile_rows is a multiple of `align`, never exceeds
    # the array's row extent (partial last block is handled by the mask).
    num_tiles = pl.cdiv(rows_arr, max_tile_rows)
    if B * num_tiles < _MIN_GRID_STEPS:          # small-problem megacore hint
        num_tiles = min(pl.cdiv(_MIN_GRID_STEPS, B), max(1, rows_arr // align))
    tile_rows = _round_up(pl.cdiv(rows_arr, num_tiles), align)
    tile_rows = min(tile_rows, (rows_arr // align) * align)
    num_tiles = pl.cdiv(rows_arr, tile_rows)

    mask_last = (num_tiles * tile_rows * _LANE) != n_pixels

    def prep(x):
        x = x.reshape(B, C, n_pixels)
        if pad:
            x = jnp.pad(x, ((0, 0), (0, 0), (0, pad)))
        return x.reshape(B, C, rows_arr, _LANE)

    res_p = prep(res)
    gt_p = prep(gt)

    kernel = functools.partial(_color_loss_kernel,
                               n_valid=n_pixels, mask_last=mask_last)

    partials = pl.pallas_call(
        kernel,
        out_shape=jax.ShapeDtypeStruct((B, num_tiles, _SUB, _LANE), jnp.float32),
        grid_spec=pl.GridSpec(
            grid=(B, num_tiles),
            in_specs=[
                pl.BlockSpec((1, C, tile_rows, _LANE), lambda b, t: (b, 0, t, 0)),
                pl.BlockSpec((1, C, tile_rows, _LANE), lambda b, t: (b, 0, t, 0)),
            ],
            out_specs=pl.BlockSpec((1, 1, _SUB, _LANE), lambda b, t: (b, t, 0, 0)),
        ),
        compiler_params=pltpu.CompilerParams(
            dimension_semantics=("parallel", "parallel"),
        ),
    )(res_p, gt_p)

    total = jnp.sum(partials)                    # tiny final reduce in plain JAX
    return total / jnp.float32(B * n_pixels) / jnp.float32(255.0)


def _color_loss_ref(res, gt):
    res = (res.astype(jnp.float32) + 1.0) * 127.5
    gt = (gt.astype(jnp.float32) + 1.0) * 127.5
    r_mean = (res[:, 0] + gt[:, 0]) / 2.0
    r = res[:, 0] - gt[:, 0]
    g = res[:, 1] - gt[:, 1]
    b = res[:, 2] - gt[:, 2]
    p = (512.0 + r_mean) * r * r / 256.0 + 4.0 * g * g \
        + (767.0 - r_mean) * b * b / 256.0
    return jnp.mean(jnp.sqrt(p + 1e-8)) / 255.0


if __name__ == "__main__":
    key = jax.random.PRNGKey(0)
    k1, k2, k3, k4 = jax.random.split(key, 4)

    # Primary case: lane-aligned small image (no wrapper pad needed at 16x16?
    # rows < 8 so the tiny-image pad path is exercised too).
    B, C, H, W = 2, 3, 16, 16
    res = jax.random.uniform(k1, (B, C, H, W), jnp.float32, minval=-1.0, maxval=1.0)
    gt = jax.random.uniform(k2, (B, C, H, W), jnp.float32, minval=-1.0, maxval=1.0)
    out = color_loss(res, gt)
    jax.block_until_ready(out)
    ref = _color_loss_ref(res, gt)
    assert jnp.allclose(out, ref, rtol=1e-5, atol=1e-6), (out, ref)

    # Unaligned case: exercises the padded / masked-last-tile path.
    res2 = jax.random.uniform(k3, (1, 3, 17, 19), jnp.float32, minval=-1.0, maxval=1.0)
    gt2 = jax.random.uniform(k4, (1, 3, 17, 19), jnp.float32, minval=-1.0, maxval=1.0)
    out2 = color_loss(res2, gt2)
    jax.block_until_ready(out2)
    ref2 = _color_loss_ref(res2, gt2)
    assert jnp.allclose(out2, ref2, rtol=1e-5, atol=1e-6), (out2, ref2)

    print("KERNEL_OK")
</pallas_src>

<mosaic_0001>
module attributes {stable_mosaic.version = 11 : i64} {
  func.func @_color_loss_kernel(%arg0: i32, %arg1: i32, %arg2: memref<1x3x8x128xf32, #tpu.memory_space<vmem>>, %arg3: memref<1x3x8x128xf32, #tpu.memory_space<vmem>>, %arg4: memref<1x1x8x128xf32, #tpu.memory_space<vmem>>) attributes {dimension_semantics = [#tpu.dimension_semantics<parallel>, #tpu.dimension_semantics<parallel>], iteration_bounds = array<i64: 2, 1>, scalar_prefetch = 0 : i64, scratch_operands = 0 : i64, tpu.core_type = #tpu.core_type<tc>, window_params = [{transform_indices = @transform_0, window_bounds = array<i64: 1, 3, 8, 128>}, {transform_indices = @transform_1, window_bounds = array<i64: 1, 3, 8, 128>}, {transform_indices = @transform_2, window_bounds = array<i64: 1, 1, 8, 128>}]} {
    %c0 = arith.constant 0 : index
    %c0_0 = arith.constant 0 : index
    %c0_1 = arith.constant 0 : index
    %c0_2 = arith.constant 0 : index
    %0 = vector.load %arg2[%c0, %c0_0, %c0_1, %c0_2] : memref<1x3x8x128xf32, #tpu.memory_space<vmem>>, vector<1x1x8x128xf32>
    %1 = vector.shape_cast %0 : vector<1x1x8x128xf32> to vector<8x128xf32>
    %c0_3 = arith.constant 0 : index
    %c1 = arith.constant 1 : index
    %c0_4 = arith.constant 0 : index
    %c0_5 = arith.constant 0 : index
    %2 = vector.load %arg2[%c0_3, %c1, %c0_4, %c0_5] : memref<1x3x8x128xf32, #tpu.memory_space<vmem>>, vector<1x1x8x128xf32>
    %3 = vector.shape_cast %2 : vector<1x1x8x128xf32> to vector<8x128xf32>
    %c0_6 = arith.constant 0 : index
    %c2 = arith.constant 2 : index
    %c0_7 = arith.constant 0 : index
    %c0_8 = arith.constant 0 : index
    %4 = vector.load %arg2[%c0_6, %c2, %c0_7, %c0_8] : memref<1x3x8x128xf32, #tpu.memory_space<vmem>>, vector<1x1x8x128xf32>
    %5 = vector.shape_cast %4 : vector<1x1x8x128xf32> to vector<8x128xf32>
    %c0_9 = arith.constant 0 : index
    %c0_10 = arith.constant 0 : index
    %c0_11 = arith.constant 0 : index
    %c0_12 = arith.constant 0 : index
    %6 = vector.load %arg3[%c0_9, %c0_10, %c0_11, %c0_12] : memref<1x3x8x128xf32, #tpu.memory_space<vmem>>, vector<1x1x8x128xf32>
    %7 = vector.shape_cast %6 : vector<1x1x8x128xf32> to vector<8x128xf32>
    %c0_13 = arith.constant 0 : index
    %c1_14 = arith.constant 1 : index
    %c0_15 = arith.constant 0 : index
    %c0_16 = arith.constant 0 : index
    %8 = vector.load %arg3[%c0_13, %c1_14, %c0_15, %c0_16] : memref<1x3x8x128xf32, #tpu.memory_space<vmem>>, vector<1x1x8x128xf32>
    %9 = vector.shape_cast %8 : vector<1x1x8x128xf32> to vector<8x128xf32>
    %c0_17 = arith.constant 0 : index
    %c2_18 = arith.constant 2 : index
    %c0_19 = arith.constant 0 : index
    %c0_20 = arith.constant 0 : index
    %10 = vector.load %arg3[%c0_17, %c2_18, %c0_19, %c0_20] : memref<1x3x8x128xf32, #tpu.memory_space<vmem>>, vector<1x1x8x128xf32>
    %11 = vector.shape_cast %10 : vector<1x1x8x128xf32> to vector<8x128xf32>
    %12 = arith.subf %1, %7 : vector<8x128xf32>
    %13 = arith.subf %3, %9 : vector<8x128xf32>
    %14 = arith.subf %5, %11 : vector<8x128xf32>
    %15 = arith.addf %1, %7 : vector<8x128xf32>
    %cst = arith.constant 4048.18726 : f32
    %16 = vector.broadcast %cst : f32 to vector<8x128xf32>
    %17 = arith.mulf %16, %15 : vector<8x128xf32>
    %cst_21 = arith.constant 40608.875 : f32
    %18 = vector.broadcast %cst_21 : f32 to vector<8x128xf32>
    %19 = arith.addf %18, %17 : vector<8x128xf32>
    %20 = arith.mulf %12, %12 : vector<8x128xf32>
    %21 = arith.mulf %19, %20 : vector<8x128xf32>
    %22 = arith.mulf %13, %13 : vector<8x128xf32>
    %cst_22 = arith.constant 6.502500e+04 : f32
    %23 = vector.broadcast %cst_22 : f32 to vector<8x128xf32>
    %24 = arith.mulf %23, %22 : vector<8x128xf32>
    %25 = arith.addf %21, %24 : vector<8x128xf32>
    %cst_23 = arith.constant 40608.875 : f32
    %26 = vector.broadcast %cst_23 : f32 to vector<8x128xf32>
    %27 = arith.subf %26, %17 : vector<8x128xf32>
    %28 = arith.mulf %14, %14 : vector<8x128xf32>
    %29 = arith.mulf %27, %28 : vector<8x128xf32>
    %30 = arith.addf %25, %29 : vector<8x128xf32>
    %cst_24 = arith.constant 9.99999993E-9 : f32
    %31 = vector.broadcast %cst_24 : f32 to vector<8x128xf32>
    %32 = arith.addf %30, %31 : vector<8x128xf32>
    %33 = math.sqrt %32 : vector<8x128xf32>
    %c0_i32 = arith.constant 0 : i32
    %34 = arith.cmpi ne, %arg1, %c0_i32 : i32
    %35 = arith.extui %34 : i1 to i32
    %c0_i32_25 = arith.constant 0 : i32
    %36 = arith.cmpi ne, %35, %c0_i32_25 : i32
    scf.if %36 {
      %40 = vector.shape_cast %33 : vector<8x128xf32> to vector<1x8x128xf32>
      %cst_28 = arith.constant dense<0.000000e+00> : vector<8x128xf32>
      %41 = vector.multi_reduction <add>, %40, %cst_28 [0] : vector<1x8x128xf32> to vector<8x128xf32>
      %c0_29 = arith.constant 0 : index
      %c0_30 = arith.constant 0 : index
      %c0_31 = arith.constant 0 : index
      %c0_32 = arith.constant 0 : index
      %42 = vector.load %arg4[%c0_29, %c0_30, %c0_31, %c0_32] : memref<1x1x8x128xf32, #tpu.memory_space<vmem>>, vector<1x1x8x128xf32>
      %43 = vector.shape_cast %42 : vector<1x1x8x128xf32> to vector<8x128xf32>
      %44 = vector.shape_cast %41 : vector<8x128xf32> to vector<1x1x8x128xf32>
      tpu.vector_store %arg4[%c0_29, %c0_30, %c0_31, %c0_32], %44 {strides = array<i32>} : memref<1x1x8x128xf32, #tpu.memory_space<vmem>>, vector<1x1x8x128xf32>,
    } else {
    }
    %c0_i32_26 = arith.constant 0 : i32
    %37 = arith.cmpi eq, %arg1, %c0_i32_26 : i32
    %38 = arith.extui %37 : i1 to i32
    %c0_i32_27 = arith.constant 0 : i32
    %39 = arith.cmpi ne, %38, %c0_i32_27 : i32
    scf.if %39 {
      %40 = tpu.iota {dimensions = array<i32: 0>} : vector<8x128xi32>
      %41 = tpu.iota {dimensions = array<i32: 1>} : vector<8x128xi32>
      %c8_i32 = arith.constant 8 : i32
      %42 = arith.muli %arg1, %c8_i32 : i32
      %43 = vector.broadcast %42 : i32 to vector<8x128xi32>
      %44 = arith.addi %43, %40 : vector<8x128xi32>
      %c128_i32 = arith.constant 128 : i32
      %45 = vector.broadcast %c128_i32 : i32 to vector<8x128xi32>
      %46 = arith.muli %44, %45 : vector<8x128xi32>
      %47 = arith.addi %46, %41 : vector<8x128xi32>
      %c256_i32 = arith.constant 256 : i32
      %48 = vector.broadcast %c256_i32 : i32 to vector<8x128xi32>
      %49 = arith.cmpi slt, %47, %48 : vector<8x128xi32>
      %cst_28 = arith.constant 0.000000e+00 : f32
      %50 = vector.broadcast %cst_28 : f32 to vector<8x128xf32>
      %51 = arith.select %49, %33, %50 : vector<8x128xi1>, vector<8x128xf32>
      %52 = vector.shape_cast %51 : vector<8x128xf32> to vector<1x8x128xf32>
      %cst_29 = arith.constant dense<0.000000e+00> : vector<8x128xf32>
      %53 = vector.multi_reduction <add>, %52, %cst_29 [0] : vector<1x8x128xf32> to vector<8x128xf32>
      %c0_30 = arith.constant 0 : index
      %c0_31 = arith.constant 0 : index
      %c0_32 = arith.constant 0 : index
      %c0_33 = arith.constant 0 : index
      %54 = vector.load %arg4[%c0_30, %c0_31, %c0_32, %c0_33] : memref<1x1x8x128xf32, #tpu.memory_space<vmem>>, vector<1x1x8x128xf32>
      %55 = vector.shape_cast %54 : vector<1x1x8x128xf32> to vector<8x128xf32>
      %56 = vector.shape_cast %53 : vector<8x128xf32> to vector<1x1x8x128xf32>
      tpu.vector_store %arg4[%c0_30, %c0_31, %c0_32, %c0_33], %56 {strides = array<i32>} : memref<1x1x8x128xf32, #tpu.memory_space<vmem>>, vector<1x1x8x128xf32>,
    } else {
    }
    return
  }
  func.func @transform_0(%arg0: i32, %arg1: i32) -> (i32, i32, i32, i32) {
    %c0_i32 = arith.constant 0 : i32
    %c0_i32_0 = arith.constant 0 : i32
    %c0_i32_1 = arith.constant 0 : i32
    return %arg0, %c0_i32, %arg1, %c0_i32_0 : i32, i32, i32, i32
  }
  func.func @transform_1(%arg0: i32, %arg1: i32) -> (i32, i32, i32, i32) {
    %c0_i32 = arith.constant 0 : i32
    %c0_i32_0 = arith.constant 0 : i32
    %c0_i32_1 = arith.constant 0 : i32
    return %arg0, %c0_i32, %arg1, %c0_i32_0 : i32, i32, i32, i32
  }
  func.func @transform_2(%arg0: i32, %arg1: i32) -> (i32, i32, i32, i32) {
    %c0_i32 = arith.constant 0 : i32
    %c0_i32_0 = arith.constant 0 : i32
    %c0_i32_1 = arith.constant 0 : i32
    return %arg0, %arg1, %c0_i32, %c0_i32_0 : i32, i32, i32, i32
  }
}

</mosaic_0001>

<bundles_post_ra>
// kernel: tpu_custom_call.1
= control target key start
LH: loop header
LB: loop body
LE: loop exit
PB: predicated region body
PF: predicated region fallthrough
CT: control target
= control target key end

     0   :  { %7 = vsyncpa [#allocation3], 0  ;;  %s809_s0 = inlined_call_operand.hbm [shape: f32[2,3,8,128], index: 0, kind: input, shape index: {}]   ;;  %s810_s1 = inlined_call_operand.hbm [shape: f32[2,3,8,128], index: 1, kind: input, shape index: {}]   ;;  %s811_s2 = inlined_call_operand.hbm [shape: f32[2,1,8,128], index: 2, kind: output, shape index: {}]  }
   0x1   :  { %9 = vsyncpa [#allocation3 + $0x1], 0 }
   0x2   :  { %10 = vsyncpa [#allocation6], 0 }
   0x3   :  { %12 = vsyncpa [#allocation6 + $0x1], 0 }
   0x4   :  { %13 = vsyncpa [#allocation4], 0 }
   0x5   :  { %15 = vsyncpa [#allocation4 + $0x1], 0  ;;  %s667_s9 = smov 0   ;;  %s669_s10 = smov 0  }
   0x6   :  { %s671_s11 = smov 0   ;;  %s673_s12 = smov 0  }
   0x7   :  { %s675_s13 = smov 0   ;;  %s677_s14 = smov 0  }
   0x8 LB: > { %s410_s15 = sadd.s32 4294967295, %s648_s14   ;;  %s411_s16 = sadd.s32 4294967294, %s648_s14   ;;  %s648_s14 = sphi %s677_s14, %s21_s14   ;;  %s644_s13 = sphi %s675_s13, %s821_s13   ;;  %s640_s12 = sphi %s673_s12, %s820_s12   ;;  %s636_s11 = sphi %s671_s11, %s819_s11   ;;  %s632_s10 = sphi %s669_s10, %s818_s10   ;;  %s628_s9 = sphi %s667_s9, %s817_s9  }
   0x9   : > { %s33_s17 = sadd.s32 1, %s644_s13  ;;  %s42_s18 = sadd.s32 1, %s636_s11 }
   0xa   : > { %p35_p0 = scmp.ge.s32.totalorder %s33_s17, 2  ;;  %p49_p1 = scmp.ne.s32.totalorder %s636_s11, %s632_s10 }
   0xb   : > { %p50_p2 = scmp.eq.s32.totalorder %s648_s14, 0  ;;  %p55_p3 = scmp.ne.s32.totalorder %s632_s10, %s628_s9 }
   0xc   : > { %s823_s17 = smov (%p35_p0, %s33_s17), 0  ;;  %p56_p5 = scmp.eq.s32.totalorder %s410_s15, 0 }
   0xd   : > { %p708_p4 = por %p50_p2, %p49_p1  ;;  %s37_s20 = ssub.s32 %s644_s13, %s823_s17 }
   0xe   : > { %p109_p6 = scmp.eq.s32.totalorder %s410_s15, 1  ;;  %p40_p7 = scmp.eq.s32.totalorder %s37_s20, 0 }
   0xf   : > { %p714_p8 = por %p56_p5, %p55_p3  ;;  %p115_p10 = scmp.eq.s32.totalorder %s411_s16, 1 }
  0x10   : > { %p718_p9 = por %p109_p6, %p49_p1  ;;  %p413_p12 = scmp.ge.s32.totalorder %s648_s14, 2 }
  0x11   : > { %s723_s23 = scalar_select %p40_p7, %s636_s11, %s42_s18  }
  0x12   : > { %p725_p11 = por %p115_p10, %p55_p3  ;;  %p448_p13 = scmp.lt.s32.totalorder %s648_s14, 2 }
  0x13   : > { %s732_s25 = sand.u32 1, %s636_s11   ;;  %s427_s27 = smul.u32 24, %s644_s13 }
  0x14   : > { %s426_s26 = smul.u32 24, %s732_s25  ;;  %p738_p0 = pnand %p448_p13, %p708_p4 }
  0x15   : > { %s145_s3 = scalar_lea.hbm %s809_s0, %s427_s27  ;;  %p416_p1 = scmp.ge.s32.totalorder %s648_s14, 1 }
  0x16   : > { %s139_s4 = scalar_lea.vmem [#allocation2], %s426_s26  ;;  %s146_s6 = sshll.u32 %s145_s3, 4  ;;  %s147_s6 = int_to_ptr.hbm [resolvable:$true] %s146_s6 }
  0x17   : > { %s148_s5 = sshll.u32 %s139_s4, 4  ;;  %s136_s7 = scalar_lea.sflag [#allocation3], %s732_s25  ;;  %s149_s5 = int_to_ptr.vmem [resolvable:$true] %s148_s5 }
  0x18   : > { %s650_s8 = smov 128   ;;  %s651_s15 = smov 8  }
  0x19   : > { %440 = dma.hbm_to_vmem [thread:$0]  (!%p738_p0), %s147_s6, 384, %s149_s5, %s136_s7, %s650_s8, %s650_s8, %s651_s15  }
  0x1a   : > { %p179_p2 = scmp.lt.s32.totalorder %s648_s14, 3  ;;  %s168_s19 = scalar_lea.hbm %s810_s1, %s427_s27 }
  0x1b   : > { %s169_s20 = sshll.u32 %s168_s19, 4  ;;  %s162_s29 = scalar_lea.vmem [#allocation5], %s426_s26  ;;  %s170_s20 = int_to_ptr.hbm [resolvable:$true] %s169_s20 }
  0x1c   : > { %p180_p3 = pnand %p416_p1, %p179_p2  ;;  %s171_s30 = sshll.u32 %s162_s29, 4  ;;  %s172_s30 = int_to_ptr.vmem [resolvable:$true] %s171_s30 }
  0x1d   : > { %s159_s3 = scalar_lea.sflag [#allocation6], %s732_s25  ;;  %s757_s4 = sand.u32 (!%p180_p3), 1, %s632_s10  }
  0x1e   : > { %443 = dma.hbm_to_vmem [thread:$0]  (!%p738_p0), %s170_s20, 384, %s172_s30, %s159_s3, %s650_s8, %s650_s8, %s651_s15  }
  0x1f   : > { %183 = sbr.rel (%p180_p3) target bundleno = 81 (0x51), region = 28  ;;  %s186_s6 = scalar_lea.sflag (!%p180_p3), [#allocation3], %s757_s4 }
  0x20   : > { %s430_s5 = smul.u32 (!%p180_p3), 24, %s757_s4 }
  0x22   : > { %s189_s7 = scalar_lea.vmem (!%p180_p3), [#allocation2], %s430_s5 }
  0x24   : > { %615 = dma.done.wait (%p714_p8), %s186_s6, 384  }
  0x25   : > { %617 = vsyncadd (%p714_p8), %s186_s6, 4294966912  ;;  %s196_s25 = scalar_lea.sflag [#allocation6], %s757_s4  ;;  %s199_s26 = scalar_lea.vmem [#allocation5], %s430_s5 }
  0x26   : > { %619 = dma.done.wait (%p714_p8), %s196_s25, 384  }
  0x27   : > { %621 = vsyncadd (%p714_p8), %s196_s25, 4294966912  ;;  %v226_v0 = vld [vmem:[%s189_s7] sm:$0xff]  ;;  %v418_v1 = vld [vmem:[%s189_s7 + $0x8] sm:$0xff]  ;;  %v274_v22 = vlaneseq  ;;  %s417_s21 = sshll.u32 %s757_s4, 3  ;;  %s423_s27 = sshll.u32 %s640_s12, 3 }
  0x28   : > { %v419_v2 = vld [vmem:[%s189_s7 + $0x10] sm:$0xff]  ;;  %v420_v4 = vld [vmem:[%s199_s26 + $0x8] sm:$0xff]  ;;  %v421_v5 = vld [vmem:[%s199_s26 + $0x10] sm:$0xff]  ;;  %s299_s15 = scalar_lea.hbm %s811_s2, %s423_s27  ;;  %s225_s16 = scalar_lea.vmem [#allocation7], %s417_s21 }
  0x29   : > { %v231_v3 = vld [vmem:[%s199_s26] sm:$0xff]  ;;  %v237_v7 = vsub.f32 %v418_v1, %v420_v4  ;;  %v238_v8 = vsub.f32 %v419_v2, %v421_v5  ;;  %v275_v24 = vshrl.u32 %v274_v22, 7  ;;  %v277_v27 = vand.u32 127, %v274_v22  ;;  %s301_s18 = sshll.u32 %s225_s16, 4  ;;  %s303_s19 = sshll.u32 %s299_s15, 4  ;;  %s302_s18 = int_to_ptr.vmem [resolvable:$true] %s301_s18  ;;  %s304_s19 = int_to_ptr.hbm [resolvable:$true] %s303_s19 }
  0x2a   : > { %v236_v6 = vsub.f32 %v226_v0, %v231_v3  ;;  %v239_v9 = vadd.f32 %v231_v3, %v226_v0  ;;  %s288_s12 = scalar_lea.sflag [#allocation4], %s757_s4  ;;  %s576_s20 = sshra.s32 %s304_s19, 4  ;;  %s577_s20 = int_to_ptr.hbm [resolvable:$true] %s576_s20 }
  0x2b   : > { %v244_v12 = vmul.f32 %v237_v7, %v237_v7  ;;  %v248_v13 = vmul.f32 %v238_v8, %v238_v8  ;;  %v281_v28 = vmul.u32 128, %v275_v24  ;;  %s578_s29 = scalar_lea.hbm %s577_s20, 8  ;;  %s582_s5 = scalar_lea.hbm %s811_s2, 16 }
  0x2c   : > { %v240_v10 = vmul.f32 4048.1873, %v239_v9  ;;  %v242_v11 = vmul.f32 %v236_v6, %v236_v6  ;;  %p579_p4 = scmp.ne.s32.totalorder %s577_s20, %s578_s29  ;;  %p583_p7 = scmp.lt.s32.totalorder %s577_s20, %s811_s2 }
  0x2d   : > { %v245_v15 = vmul.f32 65025.0, %v244_v12  ;;  %v282_v31 = vadd.s32 %v281_v28, %v277_v27  ;;  %p584_p8 = scmp.lt.s32.totalorder %s582_s5, %s578_s29 }
  0x2e   : > { %v241_v14 = vadd.f32 40608.875, %v240_v10  ;;  %v247_v16 = vsub.f32 40608.875, %v240_v10  ;;  %p580_p5 = pnand %p579_p4, %p718_p9 }
  0x2f   : > { %vm283_vm2 = vcmp.lt.s32.totalorder %v282_v31, 256  ;;  %p585_p10 = por %p584_p8, %p583_p7 }
  0x30   : > { %v243_v17 = vmul.f32 %v242_v11, %v241_v14  ;;  %v249_v18 = vmul.f32 %v248_v13, %v247_v16  ;;  %p581_p6 = pneg %p580_p5 }
  0x32   : > { %v246_v19 = vadd.f32 %v245_v15, %v243_v17  ;;  %p586_p13 = pnand %p585_p10, %p581_p6 }
  0x34   : > { %v250_v20 = vadd.f32 %v249_v18, %v246_v19 }
  0x36   : > { %v251_v21 = vadd.f32 1e-08, %v250_v20 }
  0x38   : > { %500 = vrsqrt.f32 %v251_v21  ;;  %vm259_vm0 = vcmp.eq.f32.partialorder %v251_v21, inf  ;;  %v262_v33 = vand.u32 2147483648, %v251_v21  ;;  %vm261_vm1 = vcmp.eq.f32.partialorder %v251_v21, 0.0 }
  0x3e   : > { %v501_v23 = vpop.eup %500 }
  0x3f   : > { %v253_v25 = vmul.f32 %v501_v23, %v251_v21 }
  0x41   : > { %v254_v26 = vmul.f32 %v501_v23, %v253_v25 }
  0x43   : > { %v255_v29 = vmul.f32 0.5, %v254_v26 }
  0x45   : > { %v256_v30 = vsub.f32 1.5, %v255_v29 }
  0x47   : > { %v257_v32 = vmul.f32 %v501_v23, %v256_v30 }
  0x49   : > { %v258_v34 = vmul.f32 %v257_v32, %v251_v21 }
  0x4b   : > { %v260_v35 = vsel %vm259_vm0, %v251_v21, %v258_v34 }
  0x4c   : > { %v263_v36 = vsel %vm261_vm1, %v262_v33, %v260_v35 }
  0x4d   : > { %v284_v37 = vsel %vm283_vm2, %v263_v36, 0.0 }
  0x4e   : > { %286 = vst [vmem:[%s225_s16] sm:$0xff] %v284_v37 }
  0x4f   : > { %589 = shalt.err (!%p586_p13)
}
  0x50   : > { %435 = dma.vmem_to_hbm [thread:$0]  (%p718_p9), %s302_s18, 128, %s304_s19, %s288_s12  }
  0x51 PF: > { %s315_s4 = sand.u32 1, %s628_s9   ;;  %p445_p0 = pnand %p413_p12, %p725_p11 }
  0x52   : > { %s316_s25 = scalar_lea.sflag [#allocation4], %s315_s4 }
  0x53   : > { %p446_p1 = pneg %p445_p0 }
  0x55   : > { %623 = dma.done.wait (%p446_p1), %s316_s25, 128  }
  0x56   : > { %625 = vsyncadd (%p446_p1), %s316_s25, 4294967168  ;;  %s21_s14 = sadd.s32 1, %s648_s14   ;;  %s817_s9 = smov %s632_s10 }
  0x57   : > { %p18_p2 = scmp.ge.s32.totalorder %s21_s14, 4   ;;  %s818_s10 = smov %s636_s11 }
  0x58   : > { %s819_s11 = smov %s723_s23  ;;  %s820_s12 = smov %s644_s13 }
  0x59   : > { %s821_s13 = smov %s823_s17  ;;  %20 = sbr.rel (!%p18_p2) target bundleno = 8 (0x8), region = 98 }
  0x5e   :  { %322 = vsyncpa [#allocation3], 1 }
  0x5f   :  { %324 = vsyncpa [#allocation3 + $0x1], 1 }
  0x60   :  { %325 = vsyncpa [#allocation6], 1 }
  0x61   :  { %327 = vsyncpa [#allocation6 + $0x1], 1 }
  0x62   :  { %328 = vsyncpa [#allocation4], 1 }
  0x63   :  { %330 = vsyncpa [#allocation4 + $0x1], 1 }

</bundles_post_ra>
